<compile_context>
chip_gen: v5e
topology: v5e:2x2
jax: 0.10.0
libtpu: 0.0.40
codegen_flags: <defaults>
</compile_context>

<pallas_src>
import functools

import jax
import jax.numpy as jnp
from jax.experimental import pallas as pl
from jax.experimental.pallas import tpu as pltpu

COMPUTE_DTYPE = jnp.bfloat16
_LANE = 128


def _pick_vmem_limit():
    """Generation-aware scoped-VMEM budget for pallas_call."""
    try:
        info = pltpu.get_tpu_info()
        cap = getattr(info, "vmem_capacity_bytes", None)
        if cap is not None:
            if cap <= 64 * 1024 * 1024:          # v7x-class: 64 MiB physical
                return 32 * 1024 * 1024
            if cap >= 100 * 1024 * 1024:         # v5e/v6e: 128 MiB physical
                return 96 * 1024 * 1024
    except Exception:
        pass
    return 48 * 1024 * 1024                      # known-safe everywhere


_VMEM_LIMIT_BYTES = _pick_vmem_limit()


# ---------------------------------------------------------------------------
# Small helpers
# ---------------------------------------------------------------------------
def _rup(x, m):
    return (x + m - 1) // m * m


def _tile(dim, candidates):
    """Largest tile whose padded size is within 12.5% of the minimal padding."""
    minimal = _rup(dim, candidates[-1])
    for t in candidates:
        padded = _rup(dim, t)
        if padded * 8 <= minimal * 9:
            return t, padded
    return candidates[-1], minimal


def _pad2d(a, rows, cols):
    return jnp.pad(a, ((0, rows - a.shape[0]), (0, cols - a.shape[1])))


def _nbytes(*arrays):
    return int(sum(a.size * a.dtype.itemsize for a in arrays))


def fold_bn(gamma, beta, mean, var, eps=1e-5):
    scale = gamma / jnp.sqrt(var + eps)
    bias = beta - mean * scale
    return scale, bias


# ---------------------------------------------------------------------------
# Pallas kernels
# ---------------------------------------------------------------------------
def _gemm_bn_kernel(x_ref, w_ref, s_ref, b_ref, o_ref, acc_ref, *, apply_relu):
    # Tiled (tm,tk)@(tk,tn) with f32 accumulator; BN affine (+ReLU) epilogue.
    k = pl.program_id(2)

    @pl.when(k == 0)
    def _():
        acc_ref[...] = jnp.zeros_like(acc_ref)

    acc_ref[...] += jnp.dot(x_ref[...], w_ref[...],
                            preferred_element_type=jnp.float32)

    @pl.when(k == pl.num_programs(2) - 1)
    def _():
        y = acc_ref[...] * s_ref[...] + b_ref[...]
        if apply_relu:
            y = jnp.maximum(y, 0.0)
        o_ref[...] = y.astype(o_ref.dtype)


def _gemm_bn_res_relu_kernel(x_ref, w_ref, s_ref, b_ref, r_ref, o_ref, acc_ref):
    # Last conv of the residual branch: matmul + BN + residual add + ReLU.
    k = pl.program_id(2)

    @pl.when(k == 0)
    def _():
        acc_ref[...] = jnp.zeros_like(acc_ref)

    acc_ref[...] += jnp.dot(x_ref[...], w_ref[...],
                            preferred_element_type=jnp.float32)

    @pl.when(k == pl.num_programs(2) - 1)
    def _():
        y = acc_ref[...] * s_ref[...] + b_ref[...] + r_ref[...].astype(jnp.float32)
        o_ref[...] = jnp.maximum(y, 0.0).astype(o_ref.dtype)


def _conv3x3_bn_relu_kernel(x_ref, w_ref, s_ref, b_ref, o_ref, *, taps, tm):
    # x_ref : (1, S, R, K) per-image stride-phase-decomposed activations,
    #         resident in VMEM across the (cout-block, row-block) grid.
    # w_ref : (9, K, tn) tap-major weights; s/b: (1, tn); o_ref: (1, tm, tn).
    # All 9 taps accumulate into a LOCAL (vreg-resident) f32 tile and the
    # output is written exactly once — no VMEM read-modify-write per tap.
    tn = o_ref.shape[2]
    base = pl.multiple_of(pl.program_id(2) * tm, tm)
    acc = jnp.zeros((tm, tn), jnp.float32)
    for t, (phase, shift) in enumerate(taps):      # 9 static taps, unrolled
        rows = x_ref[0, phase, pl.ds(base + shift, tm), :]
        acc = acc + jnp.dot(rows, w_ref[t], preferred_element_type=jnp.float32)
    y = acc * s_ref[...] + b_ref[...]
    o_ref[0] = jnp.maximum(y, 0.0).astype(o_ref.dtype)


# ---------------------------------------------------------------------------
# Fused op wrappers
# ---------------------------------------------------------------------------
def fused_matmul_bn(x, w, scale, bias, *, relu, residual=None,
                    out_dtype=COMPUTE_DTYPE):
    """(M,K)@(K,N) fused with folded-BN affine (+ residual add + ReLU).

    K and N are expected to be multiples of 128 (lane-dense); M is padded to
    the chosen row tile.  `residual is not None` implies a final ReLU.
    """
    m, k = x.shape
    n = w.shape[1]
    tm, m_pad = _tile(m, (256, 128, 64, 32, 16))   # tm >= 16: bf16 packing tile
    tk, k_pad = _tile(k, (512, 256, 128))
    tn, n_pad = _tile(n, (512, 256, 128))
    # Keep >= 2 parallel blocks so both v7x TensorCores get work.
    if (m_pad // tm) * (n_pad // tn) < 2 and tm > 16:
        tm = max(16, tm // 2)
        m_pad = _rup(m, tm)

    xp = _pad2d(x.astype(COMPUTE_DTYPE), m_pad, k_pad)
    wp = _pad2d(w.astype(COMPUTE_DTYPE), k_pad, n_pad)
    sp = _pad2d(scale.reshape(1, -1).astype(jnp.float32), 1, n_pad)
    bp = _pad2d(bias.reshape(1, -1).astype(jnp.float32), 1, n_pad)

    inputs = [xp, wp, sp, bp]
    in_specs = [
        pl.BlockSpec((tm, tk), lambda i, j, kk: (i, kk)),
        pl.BlockSpec((tk, tn), lambda i, j, kk: (kk, j)),
        pl.BlockSpec((1, tn), lambda i, j, kk: (0, j)),
        pl.BlockSpec((1, tn), lambda i, j, kk: (0, j)),
    ]
    if residual is None:
        kernel = functools.partial(_gemm_bn_kernel, apply_relu=relu)
    else:
        rp = _pad2d(residual.astype(COMPUTE_DTYPE), m_pad, n_pad)
        inputs.append(rp)
        in_specs.append(pl.BlockSpec((tm, tn), lambda i, j, kk: (i, j)))
        kernel = _gemm_bn_res_relu_kernel

    out_bytes = m_pad * n_pad * jnp.dtype(out_dtype).itemsize
    out = pl.pallas_call(
        kernel,
        out_shape=jax.ShapeDtypeStruct((m_pad, n_pad), out_dtype),
        grid=(m_pad // tm, n_pad // tn, k_pad // tk),
        in_specs=in_specs,
        out_specs=pl.BlockSpec((tm, tn), lambda i, j, kk: (i, j)),
        scratch_shapes=[pltpu.VMEM((tm, tn), jnp.float32)],
        compiler_params=pltpu.CompilerParams(
            dimension_semantics=("parallel", "parallel", "arbitrary"),
            vmem_limit_bytes=_VMEM_LIMIT_BYTES),
        cost_estimate=pl.CostEstimate(
            flops=2 * m_pad * n_pad * k_pad,
            transcendentals=0,
            bytes_accessed=_nbytes(*inputs) + out_bytes),
    )(*inputs)
    return out[:m, :n]


def fused_conv3x3_bn_relu(x_nhwc, w_oihw, scale, bias, *, stride):
    """3x3 conv (pad=1, given stride) + folded BN + ReLU, fully fused.

    x_nhwc: (N, H, W, Kp) with Kp a multiple of 128 (zero-padded channels).
    Returns (N, Ho, Wo, Np) bf16 with Np = round_up(Cout, 128).
    """
    nb, h, w, kp = x_nhwc.shape
    st = stride
    cout, cin = w_oihw.shape[0], w_oihw.shape[1]
    ho = (h + 2 - 3) // st + 1
    wo = (w + 2 - 3) // st + 1
    wq = -(-(w + 2) // st)              # ceil((W+2)/stride): per-phase width
    m_img = ho * st * wq                # output rows per image (junk cols incl.)

    # cout tile: lane-dense, up to 512 wide if the double-buffered weight tile
    # fits comfortably inside the VMEM budget.
    tn_cands = tuple(c for c in (512, 256, 128)
                     if 9 * kp * c * 2 * 2 <= _VMEM_LIMIT_BYTES // 4) or (128,)
    tn, n_pad = _tile(_rup(cout, _LANE), tn_cands)
    # Row tile: the local f32 accumulator must stay register-resident.
    tm_max = (128 * 1024) // (tn * 4)
    tm_cands = tuple(c for c in (256, 128, 64, 32, 16) if c <= tm_max) or (16,)
    tm, m_pad = _tile(m_img, tm_cands)

    # Resident per-image rows: every tap slice (start <= m_pad - tm + 2*wq + 2)
    # must stay in bounds.  Realised with a SINGLE spatial pad: the height is
    # padded straight to hp_total rows, so no second flat-row pad is needed.
    r_min = m_pad + 2 * wq + 2
    hp_total = -(-r_min // wq)
    r_rows = hp_total * wq

    xpad = jnp.pad(x_nhwc.astype(COMPUTE_DTYPE),
                   ((0, 0), (1, hp_total - h - 1), (1, wq * st - w - 1), (0, 0)))
    if st == 1:
        # Phase transpose is the identity for stride 1: pure reshape, no copy.
        xph = xpad.reshape(nb, 1, r_rows, kp)
    else:
        xph = xpad.reshape(nb, hp_total, wq, st, kp)
        xph = xph.transpose(0, 3, 1, 2, 4).reshape(nb, st, r_rows, kp)
    # TODO(synk): have conv1's GEMM write directly into this padded
    # (hp_total*wq, Kp) layout via its out_specs to drop the remaining
    # wrapper-side pad/reshape HBM round trip.

    # Weights (Cout, Cin, 3, 3) -> (9, Kp, Np), tap-major (t = dy*3 + dx).
    w9 = jnp.transpose(w_oihw, (2, 3, 1, 0)).reshape(9, cin, cout)
    w9 = jnp.pad(w9, ((0, 0), (0, kp - cin), (0, n_pad - cout))).astype(COMPUTE_DTYPE)
    sp = jnp.pad(scale.astype(jnp.float32), (0, n_pad - cout)).reshape(1, n_pad)
    bp = jnp.pad(bias.astype(jnp.float32), (0, n_pad - cout)).reshape(1, n_pad)

    # Tap (dy,dx): value for output row m lives at phase dx%st, row m + shift.
    taps = tuple((dx % st, dy * wq + dx // st) for dy in range(3) for dx in range(3))

    kernel = functools.partial(_conv3x3_bn_relu_kernel, taps=taps, tm=tm)
    out = pl.pallas_call(
        kernel,
        out_shape=jax.ShapeDtypeStruct((nb, m_pad, n_pad), COMPUTE_DTYPE),
        # cout-block axis outer of the row-block axis: the weight tile (which
        # depends only on j) is DMA'd nb*J times instead of nb*J*I.
        grid=(nb, n_pad // tn, m_pad // tm),
        in_specs=[
            pl.BlockSpec((1, st, r_rows, kp), lambda b, j, i: (b, 0, 0, 0)),
            pl.BlockSpec((9, kp, tn), lambda b, j, i: (0, 0, j)),
            pl.BlockSpec((1, tn), lambda b, j, i: (0, j)),
            pl.BlockSpec((1, tn), lambda b, j, i: (0, j)),
        ],
        out_specs=pl.BlockSpec((1, tm, tn), lambda b, j, i: (b, i, j)),
        compiler_params=pltpu.CompilerParams(
            dimension_semantics=("parallel", "parallel", "parallel"),
            vmem_limit_bytes=_VMEM_LIMIT_BYTES),
        cost_estimate=pl.CostEstimate(
            flops=2 * 9 * nb * m_pad * kp * n_pad,
            transcendentals=0,
            bytes_accessed=_nbytes(xph) + nb * _nbytes(w9)
            + nb * m_pad * n_pad * 2),
    )(xph, w9, sp, bp)

    # Drop the junk columns introduced by the padded (stride*Wq) row pitch.
    # TODO(synk): feed conv3 straight from this (nb, m_pad, n_pad) layout via
    # an index_map over the st*wq row pitch instead of re-materialising a
    # dense copy here.
    return out[:, :m_img, :].reshape(nb, ho, st * wq, n_pad)[:, :, :wo, :]


# ---------------------------------------------------------------------------
# BottleNeck forward (Pallas-backed)
# ---------------------------------------------------------------------------
def bottleneck_forward_nhwc(x_nhwc, params, *, stride, expansion=4,
                            out_dtype=jnp.float32):
    # Chained blocks should pass out_dtype=COMPUTE_DTYPE (bf16) to halve the
    # inter-block HBM write; keep f32 only at the true network output.
    nb, h, w, cin = x_nhwc.shape
    cm = params["w1"].shape[0]
    c4 = cm * expansion
    cin_p, cm_p, c4_p = _rup(cin, _LANE), _rup(cm, _LANE), _rup(c4, _LANE)
    st = stride

    xb = x_nhwc.astype(COMPUTE_DTYPE)

    # conv1 (1x1) + BN + ReLU
    s1, b1 = fold_bn(*params["bn1"])
    w1 = params["w1"].reshape(cm, cin).T                       # (Cin, Cm)
    x_flat = jnp.pad(xb.reshape(-1, cin), ((0, 0), (0, cin_p - cin)))
    y1 = fused_matmul_bn(x_flat, _pad2d(w1, cin_p, cm_p),
                         jnp.pad(s1, (0, cm_p - cm)),
                         jnp.pad(b1, (0, cm_p - cm)), relu=True)
    y1 = y1.reshape(nb, h, w, cm_p)

    # conv2 (3x3, stride, pad=1) + BN + ReLU — fused taps, no HBM im2col
    s2, b2 = fold_bn(*params["bn2"])
    y2 = fused_conv3x3_bn_relu(y1, params["w2"], s2, b2, stride=st)
    ho, wo = y2.shape[1], y2.shape[2]
    y2_flat = y2.reshape(nb * ho * wo, cm_p)

    # shortcut branch
    if st != 1 or cin != c4:
        ss, bs = fold_bn(*params["bns"])
        ws = params["ws"].reshape(c4, cin).T                   # (Cin, C4)
        # TODO(synk): express this strided row gather through the shortcut
        # GEMM's BlockSpec index_map instead of a wrapper-side slice (saves
        # one HBM round trip of the shortcut input).
        xs = xb[:, ::st, ::st, :].reshape(nb * ho * wo, cin)
        xs = jnp.pad(xs, ((0, 0), (0, cin_p - cin)))
        shortcut = fused_matmul_bn(xs, _pad2d(ws, cin_p, c4_p),
                                   jnp.pad(ss, (0, c4_p - c4)),
                                   jnp.pad(bs, (0, c4_p - c4)), relu=False)
    else:
        assert cin == c4, "identity shortcut requires in_channels == out_channels*expansion"
        shortcut = jnp.pad(xb.reshape(nb * ho * wo, cin), ((0, 0), (0, c4_p - c4)))

    # conv3 (1x1 expand) + BN + residual add + final ReLU, fully fused
    s3, b3 = fold_bn(*params["bn3"])
    w3 = params["w3"].reshape(c4, cm).T                        # (Cm, C4)
    out = fused_matmul_bn(y2_flat, _pad2d(w3, cm_p, c4_p),
                          jnp.pad(s3, (0, c4_p - c4)),
                          jnp.pad(b3, (0, c4_p - c4)),
                          relu=True, residual=shortcut, out_dtype=out_dtype)
    return out[:, :c4].reshape(nb, ho, wo, c4)


def bottleneck_forward(x_nchw, params, *, stride, expansion=4,
                       out_dtype=jnp.float32):
    # Thin NCHW (PyTorch) wrapper.  Chained blocks should call
    # bottleneck_forward_nhwc directly and stay NHWC / bf16 end-to-end.
    x = jnp.transpose(x_nchw, (0, 2, 3, 1))
    y = bottleneck_forward_nhwc(x, params, stride=stride, expansion=expansion,
                                out_dtype=out_dtype)
    return jnp.transpose(y, (0, 3, 1, 2))


# ---------------------------------------------------------------------------
# Parameter construction (deterministic, demo only)
# ---------------------------------------------------------------------------
def make_params(key, in_channels, out_channels, expansion=4):
    c4 = out_channels * expansion
    ks = jax.random.split(key, 16)

    def bn_params(k, c):
        k1, k2, k3, k4 = jax.random.split(k, 4)
        gamma = 1.0 + 0.1 * jax.random.normal(k1, (c,), jnp.float32)
        beta = 0.1 * jax.random.normal(k2, (c,), jnp.float32)
        mean = 0.1 * jax.random.normal(k3, (c,), jnp.float32)
        var = 1.0 + 0.1 * jax.random.uniform(k4, (c,), jnp.float32)
        return gamma, beta, mean, var

    return {
        "w1": 0.1 * jax.random.normal(ks[0], (out_channels, in_channels, 1, 1), jnp.float32),
        "bn1": bn_params(ks[1], out_channels),
        "w2": 0.1 * jax.random.normal(ks[2], (out_channels, out_channels, 3, 3), jnp.float32),
        "bn2": bn_params(ks[3], out_channels),
        "w3": 0.1 * jax.random.normal(ks[4], (c4, out_channels, 1, 1), jnp.float32),
        "bn3": bn_params(ks[5], c4),
        "ws": 0.1 * jax.random.normal(ks[6], (c4, in_channels, 1, 1), jnp.float32),
        "bns": bn_params(ks[7], c4),
    }


# ---------------------------------------------------------------------------
# Pure-JAX reference (correctness check only)
# ---------------------------------------------------------------------------
def _ref_conv(x, w, stride, padding, dtype=None):
    if dtype is not None:
        x = x.astype(dtype)
        w = w.astype(dtype)
    return jax.lax.conv_general_dilated(
        x, w, window_strides=(stride, stride),
        padding=((padding, padding), (padding, padding)),
        dimension_numbers=("NCHW", "OIHW", "NCHW"),
        preferred_element_type=jnp.float32)


def _ref_bn(x, bn):
    gamma, beta, mean, var = bn
    s = gamma / jnp.sqrt(var + 1e-5)
    b = beta - mean * s
    return x * s[None, :, None, None] + b[None, :, None, None]


def bottleneck_reference(x, p, *, stride, compute_dtype=None):
    """compute_dtype=bf16 emulates the kernels' bf16-operand / f32-accumulate
    numerics; compute_dtype=None is the exact f32 PyTorch module."""
    cdt = compute_dtype

    def rnd(t):
        return t.astype(cdt).astype(jnp.float32) if cdt is not None else t

    cin = x.shape[1]
    c4 = p["w3"].shape[0]
    y = rnd(jax.nn.relu(_ref_bn(_ref_conv(x, p["w1"], 1, 0, cdt), p["bn1"])))
    y = rnd(jax.nn.relu(_ref_bn(_ref_conv(y, p["w2"], stride, 1, cdt), p["bn2"])))
    y = _ref_bn(_ref_conv(y, p["w3"], 1, 0, cdt), p["bn3"])
    if stride != 1 or cin != c4:
        sc = rnd(_ref_bn(_ref_conv(x, p["ws"], stride, 0, cdt), p["bns"]))
    else:
        sc = rnd(x)
    return jax.nn.relu(y + sc)


# ---------------------------------------------------------------------------
def _run_case(name, key, n, cin, cout, h, w, stride):
    kx, kp = jax.random.split(key)
    x = jax.random.normal(kx, (n, cin, h, w), jnp.float32)
    params = make_params(kp, cin, cout)

    out = jax.block_until_ready(bottleneck_forward(x, params, stride=stride))

    ref16 = bottleneck_reference(x, params, stride=stride, compute_dtype=jnp.bfloat16)
    ref32 = bottleneck_reference(x, params, stride=stride)
    if out.shape != ref32.shape:
        raise AssertionError(f"{name}: shape {out.shape} != {ref32.shape}")
    if not jnp.allclose(out, ref16, atol=2e-2, rtol=2e-2):
        err = float(jnp.max(jnp.abs(out - ref16)))
        raise AssertionError(f"{name}: mismatch vs bf16-emulated reference (max abs err {err})")
    if not jnp.allclose(out, ref32, atol=6e-2, rtol=6e-2):
        err = float(jnp.max(jnp.abs(out - ref32)))
        raise AssertionError(f"{name}: mismatch vs f32 reference (max abs err {err})")


if __name__ == "__main__":
    key = jax.random.PRNGKey(0)
    k1, k2, k3 = jax.random.split(key, 3)
    # stride-2 block with projection shortcut (in=16 -> out=8*4=32)
    _run_case("stride2_projection", k1, n=2, cin=16, cout=8, h=8, w=8, stride=2)
    # stride-1 block with identity shortcut (in=32 == 8*4)
    _run_case("stride1_identity", k2, n=2, cin=32, cout=8, h=8, w=8, stride=1)
    # asymmetric H!=W, W%stride!=0, non-128 channel counts (bookkeeping check)
    _run_case("stride2_asymmetric", k3, n=1, cin=24, cout=12, h=6, w=10, stride=2)
    print("KERNEL_OK")
</pallas_src>

<mosaic_0001>
module attributes {stable_mosaic.version = 11 : i64} {
  func.func @_gemm_bn_kernel(%arg0: i32, %arg1: i32, %arg2: i32, %arg3: memref<64x128xbf16, #tpu.memory_space<vmem>>, %arg4: memref<128x128xbf16, #tpu.memory_space<vmem>>, %arg5: memref<1x128xf32, #tpu.memory_space<vmem>>, %arg6: memref<1x128xf32, #tpu.memory_space<vmem>>, %arg7: memref<64x128xbf16, #tpu.memory_space<vmem>>, %arg8: memref<64x128xf32, #tpu.memory_space<vmem>>) attributes {dimension_semantics = [#tpu.dimension_semantics<parallel>, #tpu.dimension_semantics<parallel>, #tpu.dimension_semantics<arbitrary>], iteration_bounds = array<i64: 2, 1, 1>, scalar_prefetch = 0 : i64, scratch_operands = 1 : i64, tpu.core_type = #tpu.core_type<tc>, window_params = [{transform_indices = @transform_0, window_bounds = array<i64: 64, 128>}, {transform_indices = @transform_1, window_bounds = array<i64: 128, 128>}, {transform_indices = @transform_2, window_bounds = array<i64: 1, 128>}, {transform_indices = @transform_3, window_bounds = array<i64: 1, 128>}, {transform_indices = @transform_4, window_bounds = array<i64: 64, 128>}]} {
    %c0_i32 = arith.constant 0 : i32
    %0 = arith.cmpi eq, %arg2, %c0_i32 : i32
    %1 = arith.extui %0 : i1 to i32
    %c0_i32_0 = arith.constant 0 : i32
    %2 = arith.cmpi ne, %1, %c0_i32_0 : i32
    scf.if %2 {
      %cst_10 = arith.constant 0.000000e+00 : f32
      %12 = vector.broadcast %cst_10 : f32 to vector<64x128xf32>
      %c0_11 = arith.constant 0 : index
      %c0_12 = arith.constant 0 : index
      %13 = vector.load %arg8[%c0_11, %c0_12] : memref<64x128xf32, #tpu.memory_space<vmem>>, vector<64x128xf32>
      tpu.vector_store %arg8[%c0_11, %c0_12], %12 {strides = array<i32>} : memref<64x128xf32, #tpu.memory_space<vmem>>, vector<64x128xf32>,
    } else {
    }
    %c0 = arith.constant 0 : index
    %c0_1 = arith.constant 0 : index
    %3 = vector.load %arg8[%c0, %c0_1] : memref<64x128xf32, #tpu.memory_space<vmem>>, vector<64x128xf32>
    %c0_2 = arith.constant 0 : index
    %c0_3 = arith.constant 0 : index
    %4 = vector.load %arg3[%c0_2, %c0_3] : memref<64x128xbf16, #tpu.memory_space<vmem>>, vector<64x128xbf16>
    %c0_4 = arith.constant 0 : index
    %c0_5 = arith.constant 0 : index
    %5 = vector.load %arg4[%c0_4, %c0_5] : memref<128x128xbf16, #tpu.memory_space<vmem>>, vector<128x128xbf16>
    %cst = arith.constant dense<0.000000e+00> : vector<64x128xf32>
    %6 = tpu.matmul %4, %5, %cst {dimension_numbers = #tpu.dot_dimension_numbers<[1], [0], [0], [1], [0, 0, 1, 1], [], []>} : vector<64x128xbf16>, vector<128x128xbf16>, vector<64x128xf32> -> vector<64x128xf32>
    %7 = arith.addf %3, %6 : vector<64x128xf32>
    %c0_6 = arith.constant 0 : index
    %c0_7 = arith.constant 0 : index
    %8 = vector.load %arg8[%c0_6, %c0_7] : memref<64x128xf32, #tpu.memory_space<vmem>>, vector<64x128xf32>
    tpu.vector_store %arg8[%c0_6, %c0_7], %7 {strides = array<i32>} : memref<64x128xf32, #tpu.memory_space<vmem>>, vector<64x128xf32>,
    %c0_i32_8 = arith.constant 0 : i32
    %9 = arith.cmpi eq, %arg2, %c0_i32_8 : i32
    %10 = arith.extui %9 : i1 to i32
    %c0_i32_9 = arith.constant 0 : i32
    %11 = arith.cmpi ne, %10, %c0_i32_9 : i32
    scf.if %11 {
      %c0_10 = arith.constant 0 : index
      %c0_11 = arith.constant 0 : index
      %12 = vector.load %arg8[%c0_10, %c0_11] : memref<64x128xf32, #tpu.memory_space<vmem>>, vector<64x128xf32>
      %c0_12 = arith.constant 0 : index
      %c0_13 = arith.constant 0 : index
      %13 = vector.load %arg5[%c0_12, %c0_13] : memref<1x128xf32, #tpu.memory_space<vmem>>, vector<1x128xf32>
      %14 = vector.broadcast %13 : vector<1x128xf32> to vector<64x128xf32>
      %15 = arith.mulf %12, %14 : vector<64x128xf32>
      %c0_14 = arith.constant 0 : index
      %c0_15 = arith.constant 0 : index
      %16 = vector.load %arg6[%c0_14, %c0_15] : memref<1x128xf32, #tpu.memory_space<vmem>>, vector<1x128xf32>
      %17 = vector.broadcast %16 : vector<1x128xf32> to vector<64x128xf32>
      %18 = arith.addf %15, %17 : vector<64x128xf32>
      %cst_16 = arith.constant 0.000000e+00 : f32
      %19 = vector.broadcast %cst_16 : f32 to vector<64x128xf32>
      %20 = arith.maximumf %18, %19 : vector<64x128xf32>
      %21 = arith.truncf %20 : vector<64x128xf32> to vector<64x128xbf16>
      %c0_17 = arith.constant 0 : index
      %c0_18 = arith.constant 0 : index
      %22 = vector.load %arg7[%c0_17, %c0_18] : memref<64x128xbf16, #tpu.memory_space<vmem>>, vector<64x128xbf16>
      tpu.vector_store %arg7[%c0_17, %c0_18], %21 {strides = array<i32>} : memref<64x128xbf16, #tpu.memory_space<vmem>>, vector<64x128xbf16>,
    } else {
    }
    return
  }
  func.func @transform_0(%arg0: i32, %arg1: i32, %arg2: i32) -> (i32, i32) {
    %c0_i32 = arith.constant 0 : i32
    return %arg0, %arg2 : i32, i32
  }
  func.func @transform_1(%arg0: i32, %arg1: i32, %arg2: i32) -> (i32, i32) {
    %c0_i32 = arith.constant 0 : i32
    return %arg2, %arg1 : i32, i32
  }
  func.func @transform_2(%arg0: i32, %arg1: i32, %arg2: i32) -> (i32, i32) {
    %c0_i32 = arith.constant 0 : i32
    %c0_i32_0 = arith.constant 0 : i32
    return %c0_i32, %arg1 : i32, i32
  }
  func.func @transform_3(%arg0: i32, %arg1: i32, %arg2: i32) -> (i32, i32) {
    %c0_i32 = arith.constant 0 : i32
    %c0_i32_0 = arith.constant 0 : i32
    return %c0_i32, %arg1 : i32, i32
  }
  func.func @transform_4(%arg0: i32, %arg1: i32, %arg2: i32) -> (i32, i32) {
    %c0_i32 = arith.constant 0 : i32
    return %arg0, %arg1 : i32, i32
  }
}

</mosaic_0001>

<bundles_post_ra>
// kernel: tpu_custom_call.1
= control target key start
LH: loop header
LB: loop body
LE: loop exit
PB: predicated region body
PF: predicated region fallthrough
CT: control target
= control target key end

     0   :  { %s1220_s0 = inlined_call_operand.hbm [shape: bf16[128,128], index: 0, kind: input, shape index: {}]   ;;  %s1221_s1 = inlined_call_operand.hbm [shape: bf16[128,128], index: 1, kind: input, shape index: {}]   ;;  %s1222_s2 = inlined_call_operand.vmem [shape: f32[1,128], index: 2, kind: input, shape index: {}]   ;;  %s1223_s3 = inlined_call_operand.vmem [shape: f32[1,128], index: 3, kind: input, shape index: {}]   ;;  %s1224_s4 = inlined_call_operand.hbm [shape: bf16[128,128], index: 4, kind: output, shape index: {}]  }
   0x1   :  { %1228 = sst [smem:[#allocation13_spill]] %s1221_s1 }
   0x2   :  { %9 = vsyncpa [#allocation4], 0 }
   0x3   :  { %11 = vsyncpa [#allocation4 + $0x1], 0 }
   0x4   :  { %12 = vsyncpa [#allocation7], 0 }
   0x5   :  { %13 = vsyncpa [#allocation5], 0 }
   0x6   :  { %15 = vsyncpa [#allocation5 + $0x1], 0  ;;  %s1049_s15 = smov 0   ;;  %s1051_s16 = smov 0  }
   0x7   :  { %s1053_s17 = smov 0   ;;  %s1055_s18 = smov 0  }
   0x8   :  { %s1057_s19 = smov 0   ;;  %s1059_s20 = smov 0  }
   0x9 LB: > { %s664_s21 = sadd.s32 4294967295, %s1017_s20   ;;  %s665_s22 = sadd.s32 4294967294, %s1017_s20   ;;  %s1017_s20 = sphi %s1059_s20, %s21_s20   ;;  %s1013_s19 = sphi %s1057_s19, %s1245_s19   ;;  %s1009_s18 = sphi %s1055_s18, %s1244_s18   ;;  %s1005_s17 = sphi %s1053_s17, %s1243_s17   ;;  %s1001_s16 = sphi %s1051_s16, %s1242_s16   ;;  %s997_s15 = sphi %s1049_s15, %s1241_s15  }
   0xa   : > { %p62_p0 = scmp.ne.s32.totalorder %s1001_s16, %s997_s15  ;;  %p1083_p1 = scmp.eq.s32.totalorder %s664_s21, 0 }
   0xb   : > { %p1087_p2 = scmp.eq.s32.totalorder %s664_s21, 1  ;;  %p174_p3 = scmp.eq.s32.totalorder %s665_s22, 1 }
   0xc   : > { %p1093_p4 = por %p1083_p1, %p62_p0  ;;  %p666_p5 = scmp.ge.s32.totalorder %s1017_s20, 1 }
   0xd   : > { %p1098_p6 = por %p174_p3, %p62_p0  ;;  %p181_p7 = scmp.lt.s32.totalorder %s1017_s20, 3 }
   0xe   : > { %s1233_s1 = sld [smem:[#allocation13_spill]]  ;;  %s1019_s5 = smov [#allocation6]  }
   0xf   : > { %p1106_p8 = pnand %p666_p5, %p181_p7  ;;  %s198_s6 = sshll.u32 %s1019_s5, 4  ;;  %s199_s6 = int_to_ptr.vmem [resolvable:$true] %s198_s6 }
  0x10   : > { %p670_p11 = scmp.ge.s32.totalorder %s1017_s20, 2  ;;  %s1225_s7 = smov 64  }
  0x11   : > { %p800_p9 = pneg %p1106_p8  ;;  %s1226_s8 = smov 4  }
  0x12   : > { %s40_s9 = sadd.s32 1, %s1013_s19  ;;  %s49_s10 = sadd.s32 1, %s1005_s17 }
  0x13   : > { %p801_p10 = pnand %p800_p9, %p1083_p1  ;;  %p42_p12 = scmp.ge.s32.totalorder %s40_s9, 2 }
  0x14   : > { %s196_s29 = sshll.u32 %s1233_s1, 4  ;;  %p56_p13 = scmp.ne.s32.totalorder %s1005_s17, %s1001_s16  ;;  %s197_s29 = int_to_ptr.hbm [resolvable:$true] %s196_s29 }
  0x15   : > { %803 = dma.hbm_to_vmem [thread:$0]  (!%p801_p10), %s197_s29, 1024, %s199_s6, [#allocation7], %s1225_s7, %s1225_s7, %s1226_s8  }
  0x16   : > { %p57_p0 = scmp.eq.s32.totalorder %s1017_s20, 0  ;;  %s1247_s9 = smov (%p42_p12, %s40_s9), 0 }
  0x17   : > { %1235 = sst [smem:[#allocation12_spill]] %s1247_s9  ;;  %p1131_p5 = por %p1087_p2, %p56_p13 }
  0x18   : > { %p1125_p3 = por %p57_p0, %p56_p13  ;;  %s44_s13 = ssub.s32 %s1013_s19, %s1247_s9 }
  0x19   : > { %p813_p7 = scmp.lt.s32.totalorder %s1017_s20, 2  ;;  %p47_p9 = scmp.eq.s32.totalorder %s44_s13, 0 }
  0x1a   : > { %s224_s14 = sand.u32 1, %s1005_s17   ;;  %s731_s27 = sshll.u32 %s1013_s19, 5 }
  0x1b   : > { %s671_s21 = sshll.u32 %s224_s14, 5  ;;  %s234_s5 = scalar_lea.hbm %s1220_s0, %s731_s27 }
  0x1c   : > { %s1140_s22 = scalar_select %p47_p9, %s1005_s17, %s49_s10  }
  0x1d   : > { %s228_s6 = scalar_lea.vmem [#allocation3], %s671_s21  ;;  %s235_s24 = sshll.u32 %s234_s5, 4  ;;  %s236_s24 = int_to_ptr.hbm [resolvable:$true] %s235_s24 }
  0x1e   : > { %s237_s7 = sshll.u32 %s228_s6, 4  ;;  %p805_p2 = pnand %p813_p7, %p1125_p3  ;;  %s238_s7 = int_to_ptr.vmem [resolvable:$true] %s237_s7 }
  0x1f   : > { %s225_s8 = scalar_lea.sflag [#allocation4], %s224_s14  ;;  %s1238_s1 = smov 4  }
  0x20   : > { %s1239_s9 = smov 64   ;;  %249 = sbr.rel (%p1106_p8) target bundleno = 226 (0xe2), region = 36 }
  0x21   : > { %807 = dma.hbm_to_vmem [thread:$0]  (!%p805_p2), %s236_s24, 512, %s238_s7, %s225_s8, %s1239_s9, %s1239_s9, %s1238_s1  }
  0x22   : > { %s1154_s10 = sand.u32 (!%p1106_p8), 1, %s1001_s16  }
  0x23   : > { %s675_s13 = sshll.u32 (!%p1106_p8), %s1154_s10, 5  ;;  %s252_s21 = scalar_lea.sflag (!%p1106_p8), [#allocation4], %s1154_s10 }
  0x24   : > { %s1160_s11 = scalar_lea.vmem (!%p1106_p8), [#allocation3], %s675_s13 }
  0x25   : > { %984 = dma.done.wait (%p1093_p4), %s252_s21, 512  }
  0x26   : > { %986 = vsyncadd (%p1093_p4), %s252_s21, 4294966784 }
  0x27   : > { %988 = dma.done.wait (%p1083_p1), [#allocation7], 1024  }
  0x28   : > { %990 = vsyncadd (%p1083_p1), [#allocation7], 4294966272  ;;  %v743_v0 = vld [vmem:[#allocation6 + $0x38] sm:$0xff]  ;;  %v742_v1 = vld [vmem:[#allocation6 + $0x30] sm:$0xff]  ;;  %s744_s7 = sshll.u32 %s1009_s18, 5  ;;  %s291_s27 = scalar_lea.vmem [#allocation8], %s675_s13 }
  0x29   : > { %417 = vmatpush.bf16.msra.mxu0 %v743_v0  ;;  %768 = vmatpush.bf16.msra.mxu1 %v743_v0  ;;  %v741_v2 = vld [vmem:[#allocation6 + $0x28] sm:$0xff]  ;;  %v740_v3 = vld [vmem:[#allocation6 + $0x20] sm:$0xff]  ;;  %v739_v4 = vld [vmem:[#allocation6 + $0x18] sm:$0xff]  ;;  %s534_s14 = scalar_lea.hbm %s1224_s4, %s744_s7  ;;  %s535_s28 = sshll.u32 %s291_s27, 4  ;;  %s536_s28 = int_to_ptr.vmem [resolvable:$true] %s535_s28 }
  0x2a   : > { %769 = vmatpush.bf16.msra.mxu2 %v743_v0  ;;  %770 = vmatpush.bf16.msra.mxu3 %v743_v0  ;;  %v738_v5 = vld [vmem:[#allocation6 + $0x10] sm:$0xff]  ;;  %v737_v6 = vld [vmem:[#allocation6 + $0x8] sm:$0xff]  ;;  %v736_v7 = vld [vmem:[#allocation6] sm:$0xff]  ;;  %s537_s18 = sshll.u32 %s534_s14, 4  ;;  %s522_s29 = scalar_lea.sflag [#allocation5], %s1154_s10  ;;  %s538_s18 = int_to_ptr.hbm [resolvable:$true] %s537_s18 }
  0x2b   : > { %v732_v8 = vld [vmem:[%s1160_s11] sm:$0xff]  ;;  %v733_v9 = vld [vmem:[%s1160_s11 + $0x8] sm:$0xff]  ;;  %v734_v10 = vld [vmem:[%s1160_s11 + $0x10] sm:$0xff]  ;;  %s945_s5 = sshra.s32 %s538_s18, 4  ;;  %s951_s21 = scalar_lea.hbm %s1224_s4, 64  ;;  %s946_s5 = int_to_ptr.hbm [resolvable:$true] %s945_s5 }
  0x2c   : > { %v735_v11 = vld [vmem:[%s1160_s11 + $0x18] sm:$0xff]  ;;  %v869_v14 = vld [vmem:[%s1222_s2] ss:$0 sm:$0xff]  ;;  %s947_s6 = scalar_lea.hbm %s946_s5, 32  ;;  %p952_p10 = scmp.lt.s32.totalorder %s946_s5, %s1224_s4 }
  0x2d   : > { %418 = vmatpush.bf16.msra.mxu0 %v742_v1  ;;  %771 = vmatpush.bf16.msra.mxu1 %v742_v1  ;;  %v870_v16 = vld [vmem:[%s1223_s3] ss:$0 sm:$0xff]  ;;  %p948_p1 = scmp.ne.s32.totalorder %s946_s5, %s947_s6  ;;  %p953_p12 = scmp.lt.s32.totalorder %s951_s21, %s947_s6 }
  0x2e   : > { %772 = vmatpush.bf16.msra.mxu2 %v742_v1  ;;  %773 = vmatpush.bf16.msra.mxu3 %v742_v1 }
  0x2f   : > { %p949_p4 = pnand %p948_p1, %p1131_p5  ;;  %p954_p13 = por %p953_p12, %p952_p10 }
  0x31   : > { %419 = vmatpush.bf16.msra.mxu0 %v741_v2  ;;  %774 = vmatpush.bf16.msra.mxu1 %v741_v2  ;;  %p950_p8 = pneg %p949_p4 }
  0x32   : > { %775 = vmatpush.bf16.msra.mxu2 %v741_v2  ;;  %776 = vmatpush.bf16.msra.mxu3 %v741_v2 }
  0x33   : > { %p955_p0 = pnand %p954_p13, %p950_p8 }
  0x35   : > { %420 = vmatpush.bf16.msra.mxu0 %v740_v3  ;;  %777 = vmatpush.bf16.msra.mxu1 %v740_v3 }
  0x36   : > { %778 = vmatpush.bf16.msra.mxu2 %v740_v3  ;;  %779 = vmatpush.bf16.msra.mxu3 %v740_v3 }
  0x39   : > { %421 = vmatpush.bf16.msra.mxu0 %v739_v4  ;;  %780 = vmatpush.bf16.msra.mxu1 %v739_v4 }
  0x3a   : > { %781 = vmatpush.bf16.msra.mxu2 %v739_v4  ;;  %782 = vmatpush.bf16.msra.mxu3 %v739_v4 }
  0x3d   : > { %422 = vmatpush.bf16.msra.mxu0 %v738_v5  ;;  %783 = vmatpush.bf16.msra.mxu1 %v738_v5 }
  0x3e   : > { %784 = vmatpush.bf16.msra.mxu2 %v738_v5  ;;  %785 = vmatpush.bf16.msra.mxu3 %v738_v5 }
  0x41   : > { %423 = vmatpush.bf16.msra.mxu0 %v737_v6  ;;  %786 = vmatpush.bf16.msra.mxu1 %v737_v6 }
  0x42   : > { %787 = vmatpush.bf16.msra.mxu2 %v737_v6  ;;  %788 = vmatpush.bf16.msra.mxu3 %v737_v6 }
  0x45   : > { %424 = vmatpush.bf16.msra.mxu0 %v736_v7  ;;  %789 = vmatpush.bf16.msra.mxu1 %v736_v7 }
  0x46   : > { %790 = vmatpush.bf16.msra.mxu2 %v736_v7  ;;  %791 = vmatpush.bf16.msra.mxu3 %v736_v7 }
  0x48   : > { %425 = vmatmul.bf16.vlgmr.msra.gmra.mxu0 %v732_v8  ;;  %430 = vmatmul.bf16.vlgmr.msra.gmra.mxu1 %v733_v9 }
  0x49   : > { %435 = vmatmul.bf16.vlgmr.msra.gmra.mxu2 %v734_v10  ;;  %440 = vmatmul.bf16.vlgmr.msra.gmra.mxu3 %v735_v11 }
  0xc5   : > { %v426_v12 = vpop.f32.mrf.mxu0  ;;  %v431_v13 = vpop.f32.mrf.mxu1 }
  0xc6   : > { %v477_v15 = vmul.f32 %v869_v14, %v426_v12  ;;  %v479_v17 = vmul.f32 %v869_v14, %v431_v13 }
  0xc8   : > { %v489_v22 = vadd.f32 %v870_v16, %v477_v15  ;;  %v491_v23 = vadd.f32 %v870_v16, %v479_v17 }
  0xca   : > { %v497_v30 = vmax.f32 %v489_v22, 0.0  ;;  %v499_v31 = vmax.f32 %v491_v23, 0.0 }
  0xcc   : > { %v436_v18 = vpop.f32.mrf.mxu2  ;;  %v441_v19 = vpop.f32.mrf.mxu3 }
  0xcd   : > { %v428_v20 = vpop.f32.mrf.mxu0  ;;  %v433_v21 = vpop.f32.mrf.mxu1  ;;  %v481_v28 = vmul.f32 %v869_v14, %v436_v18  ;;  %v483_v29 = vmul.f32 %v869_v14, %v441_v19 }
  0xce   : > { %v478_v24 = vmul.f32 %v869_v14, %v428_v20  ;;  %v480_v25 = vmul.f32 %v869_v14, %v433_v21 }
  0xcf   : > { %v493_v38 = vadd.f32 %v870_v16, %v481_v28  ;;  %v495_v39 = vadd.f32 %v870_v16, %v483_v29 }
  0xd0   : > { %v490_v26 = vadd.f32 %v870_v16, %v478_v24  ;;  %v492_v27 = vadd.f32 %v870_v16, %v480_v25 }
  0xd1   : > { %v501_v44 = vmax.f32 %v493_v38, 0.0  ;;  %v503_v45 = vmax.f32 %v495_v39, 0.0 }
  0xd2   : > { %v498_v32 = vmax.f32 %v490_v26, 0.0  ;;  %v500_v33 = vmax.f32 %v492_v27, 0.0 }
  0xd4   : > { %v748_v34 = vpack.c.bf16 %v498_v32, %v497_v30  ;;  %v753_v35 = vpack.c.bf16 %v500_v33, %v499_v31  ;;  %v438_v36 = vpop.f32.mrf.mxu2  ;;  %v443_v37 = vpop.f32.mrf.mxu3 }
  0xd5   : > { %v482_v40 = vmul.f32 %v869_v14, %v438_v36  ;;  %v484_v41 = vmul.f32 %v869_v14, %v443_v37 }
  0xd6   : > { %749 = vst [vmem:[%s291_s27] sm:$0xff] %v748_v34  }
  0xd7   : > { %765 = vst [vmem:[%s291_s27 + $0x8] sm:$0xff] %v753_v35   ;;  %v494_v42 = vadd.f32 %v870_v16, %v482_v40  ;;  %v496_v43 = vadd.f32 %v870_v16, %v484_v41 }
  0xd9   : > { %v502_v46 = vmax.f32 %v494_v42, 0.0  ;;  %v504_v47 = vmax.f32 %v496_v43, 0.0 }
  0xdb   : > { %v758_v48 = vpack.c.bf16 %v502_v46, %v501_v44  ;;  %v763_v49 = vpack.c.bf16 %v504_v47, %v503_v45 }
  0xdd   : > { %766 = vst [vmem:[%s291_s27 + $0x10] sm:$0xff] %v758_v48  }
  0xde   : > { %767 = vst [vmem:[%s291_s27 + $0x18] sm:$0xff] %v763_v49  }
  0xdf   : > { %958 = shalt.err (!%p955_p0)
}
  0xe0   : > { %s1022_s10 = smov 64   ;;  %s1023_s23 = smov 4  }
  0xe1   : > { %798 = dma.vmem_to_hbm [thread:$0]  (%p1131_p5), %s536_s28, 512, %s538_s18, %s522_s29, %s1022_s10, %s1022_s10, %s1023_s23  }
  0xe2 PF: > { %s552_s25 = sand.u32 1, %s997_s15   ;;  %p809_p3 = pnand %p670_p11, %p1098_p6 }
  0xe3   : > { %s553_s30 = scalar_lea.sflag [#allocation5], %s552_s25 }
  0xe4   : > { %p810_p7 = pneg %p809_p3 }
  0xe6   : > { %992 = dma.done.wait (%p810_p7), %s553_s30, 512  }
  0xe7   : > { %994 = vsyncadd (%p810_p7), %s553_s30, 4294966784  ;;  %s21_s20 = sadd.s32 1, %s1017_s20   ;;  %s1240_s12 = sld [smem:[#allocation12_spill]] }
  0xe8   : > { %p18_p9 = scmp.ge.s32.totalorder %s21_s20, 4   ;;  %s1241_s15 = smov %s1001_s16 }
  0xe9   : > { %s1242_s16 = smov %s1005_s17  ;;  %s1243_s17 = smov %s1140_s22 }
  0xea   : > { %s1244_s18 = smov %s1013_s19  ;;  %20 = sbr.rel (!%p18_p9) target bundleno = 9 (0x9), region = 100 }
  0xed   : > { %s1245_s19 = smov %s1240_s12 }
  0xef   :  { %559 = vsyncpa [#allocation4], 1 }
  0xf0   :  { %561 = vsyncpa [#allocation4 + $0x1], 1 }
  0xf1   :  { %562 = vsyncpa [#allocation7], 1 }
  0xf2   :  { %563 = vsyncpa [#allocation5], 1 }
  0xf3   :  { %565 = vsyncpa [#allocation5 + $0x1], 1 }

</bundles_post_ra>
